<compile_context>
chip_gen: v5e
topology: v5e:2x2
jax: 0.10.0
libtpu: 0.0.40
codegen_flags: <defaults>
</compile_context>

<pallas_src>
import functools

import jax
import jax.numpy as jnp
from jax import lax
from jax.experimental import pallas as pl
from jax.experimental.pallas import tpu as pltpu

COLS = 128               # lane dimension
STRIP_ROWS = 512         # in-tile strip-mining granularity (multiple of 16)
MAX_BLOCK_ROWS = 16384   # 16384 x 128 x 4 B = 8 MiB per f32 input block
SMALL_ROWS = 1024        # <= this: single full-extent tile, no strip-mining
VMEM_LIMIT_BYTES = 48 << 20


def _r2_partial_kernel(strip_rows, n_strips, rows_rem, mask_tail,
                       shift_ref, yp_ref, yt_ref, out_ref):
    """Per-tile fused partials: [sum(yt-c), sum((yt-c)^2), sum((yt-yp)^2)]."""
    c = shift_ref[0, 0]

    def tile_sums(masked):
        if n_strips == 1 and not masked:
            # Small single-tile case: the whole (full-extent) tile in one shot.
            yt = yt_ref[...].astype(jnp.float32)
            yp = yp_ref[...].astype(jnp.float32)
            ytc = yt - c
            d = yt - yp
            return jnp.sum(ytc), jnp.sum(ytc * ytc), jnp.sum(d * d)

        zero = jnp.zeros((1, COLS), jnp.float32)

        def body(i, carry):
            s_acc, sq_acc, res_acc = carry
            r0 = pl.multiple_of(i * strip_rows, strip_rows)
            yt = yt_ref[pl.ds(r0, strip_rows), :].astype(jnp.float32)
            yp = yp_ref[pl.ds(r0, strip_rows), :].astype(jnp.float32)
            if masked:
                # Only the last grid tile contains Pallas-padded (undefined)
                # rows; setting them to c makes both (yt-c) and (yt-yp) zero.
                row = r0 + lax.broadcasted_iota(jnp.int32, (strip_rows, COLS), 0)
                valid = row < rows_rem
                yt = jnp.where(valid, yt, c)
                yp = jnp.where(valid, yp, c)
            ytc = yt - c
            d = yt - yp
            s_acc = s_acc + jnp.sum(ytc, axis=0, keepdims=True)
            sq_acc = sq_acc + jnp.sum(ytc * ytc, axis=0, keepdims=True)
            res_acc = res_acc + jnp.sum(d * d, axis=0, keepdims=True)
            return s_acc, sq_acc, res_acc

        s_acc, sq_acc, res_acc = lax.fori_loop(
            0, n_strips, body, (zero, zero, zero),
            unroll=min(4, n_strips))
        # One cross-lane reduce per quantity, once per tile.
        return jnp.sum(s_acc), jnp.sum(sq_acc), jnp.sum(res_acc)

    def write(vals):
        s, sq, res = vals
        out_ref[0, 0] = s
        out_ref[0, 1] = sq
        out_ref[0, 2] = res

    if mask_tail:
        t = pl.program_id(0)
        nt = pl.num_programs(0)

        @pl.when(t < nt - 1)
        def _full_tile():
            write(tile_sums(False))

        @pl.when(t == nt - 1)
        def _tail_tile():
            write(tile_sums(True))
    else:
        write(tile_sums(False))


def r2_loss(y_pred, y_true):
    assert y_pred.shape == y_true.shape, "y_pred / y_true must match"
    n = int(y_true.size)

    flat_p = y_pred.reshape(-1)
    flat_t = y_true.reshape(-1)

    # Shift for numerically-stable ss_tot (the identity is exact for any c).
    c = flat_t[0].astype(jnp.float32)

    rem = n % COLS
    aligned = n - rem
    rows_total = aligned // COLS

    # Ragged <128-element tail: O(128) plain-JAX work instead of a full-array
    # jnp.pad copy of both inputs.
    if rem:
        tp = flat_p[aligned:].astype(jnp.float32)
        tt = flat_t[aligned:].astype(jnp.float32)
        ttc = tt - c
        dt = tt - tp
        tail = jnp.stack([jnp.sum(ttc), jnp.sum(ttc * ttc), jnp.sum(dt * dt)])
    else:
        tail = jnp.zeros((3,), jnp.float32)

    if rows_total == 0:
        totals = tail
    else:
        if rem:
            xp = flat_p[:aligned].reshape(rows_total, COLS)
            xt = flat_t[:aligned].reshape(rows_total, COLS)
        else:
            xp = flat_p.reshape(rows_total, COLS)
            xt = flat_t.reshape(rows_total, COLS)

        if rows_total <= SMALL_ROWS:
            block_rows = rows_total       # full extent -> no (8,128) constraint
            strip_rows = rows_total
            n_strips = 1
        else:
            # <= 8 MiB per input block, multiple of STRIP_ROWS, and at most
            # ~half the rows so nt >= 2 (both v7x TensorCores stream HBM).
            half = (rows_total + 1) // 2
            block_rows = min(
                MAX_BLOCK_ROWS,
                ((half + STRIP_ROWS - 1) // STRIP_ROWS) * STRIP_ROWS)
            strip_rows = STRIP_ROWS
            n_strips = block_rows // STRIP_ROWS

        nt = pl.cdiv(rows_total, block_rows)
        rows_rem = rows_total - (nt - 1) * block_rows   # valid rows, last tile
        mask_tail = rows_rem != block_rows

        kernel = functools.partial(
            _r2_partial_kernel, strip_rows, n_strips, rows_rem, mask_tail)

        partials = pl.pallas_call(
            kernel,
            out_shape=jax.ShapeDtypeStruct((nt, 3), jnp.float32),
            grid_spec=pltpu.PrefetchScalarGridSpec(
                num_scalar_prefetch=0,
                grid=(nt,),
                in_specs=[
                    # shift scalar, whole (1,1) array resident in SMEM
                    pl.BlockSpec(memory_space=pltpu.MemorySpace.SMEM),
                    pl.BlockSpec((block_rows, COLS), lambda t: (t, 0)),
                    pl.BlockSpec((block_rows, COLS), lambda t: (t, 0)),
                ],
                out_specs=pl.BlockSpec(
                    (1, 3), lambda t: (t, 0),
                    memory_space=pltpu.MemorySpace.SMEM),
            ),
            compiler_params=pltpu.CompilerParams(
                dimension_semantics=("parallel",),
                vmem_limit_bytes=VMEM_LIMIT_BYTES),
        )(c.reshape(1, 1), xp, xt)

        # Tiny O(num_tiles) combine in plain JAX.
        totals = jnp.sum(partials, axis=0) + tail

    s, sq, res = totals[0], totals[1], totals[2]
    ss_tot = sq - (s * s) / jnp.float32(n)      # == sum((yt - mean)^2)
    # Note: ss_tot == 0 (constant y_true) -> inf/nan, same as the PyTorch ref.
    return res / ss_tot


if __name__ == "__main__":
    key = jax.random.PRNGKey(0)
    k1, k2 = jax.random.split(key)
    # Small NCHW-shaped tensors, consistent with how the loss is used on
    # conv-net outputs.
    y_pred = jax.random.normal(k1, (2, 4, 16, 16), dtype=jnp.float32)
    y_true = jax.random.normal(k2, (2, 4, 16, 16), dtype=jnp.float32)

    loss = jax.block_until_ready(jax.jit(r2_loss)(y_pred, y_true))

    # Reference check against plain JAX (same math as the PyTorch module).
    y_mean = jnp.mean(y_true)
    ss_tot = jnp.sum((y_true - y_mean) ** 2)
    ss_res = jnp.sum((y_true - y_pred) ** 2)
    ref = ss_res / ss_tot
    assert jnp.allclose(loss, ref, rtol=1e-4, atol=1e-6), (loss, ref)

    print("KERNEL_OK")
</pallas_src>

<mosaic_0001>
module attributes {stable_mosaic.version = 11 : i64} {
  func.func @_r2_partial_kernel(%arg0: i32, %arg1: memref<1x1xf32, #tpu.memory_space<smem>>, %arg2: memref<16x128xf32, #tpu.memory_space<vmem>>, %arg3: memref<16x128xf32, #tpu.memory_space<vmem>>, %arg4: memref<1x3xf32, #tpu.memory_space<smem>>) attributes {dimension_semantics = [#tpu.dimension_semantics<parallel>], iteration_bounds = array<i64: 1>, scalar_prefetch = 0 : i64, scratch_operands = 0 : i64, tpu.core_type = #tpu.core_type<tc>, window_params = [{transform_indices = @transform_0, window_bounds = array<i64: 1, 1>}, {transform_indices = @transform_1, window_bounds = array<i64: 16, 128>}, {transform_indices = @transform_2, window_bounds = array<i64: 16, 128>}, {transform_indices = @transform_3, window_bounds = array<i64: 1, 3>}]} {
    %c0 = arith.constant 0 : index
    %c0_0 = arith.constant 0 : index
    %0 = memref.load %arg1[%c0, %c0_0] : memref<1x1xf32, #tpu.memory_space<smem>>
    %c0_1 = arith.constant 0 : index
    %c0_2 = arith.constant 0 : index
    %1 = vector.load %arg3[%c0_1, %c0_2] : memref<16x128xf32, #tpu.memory_space<vmem>>, vector<16x128xf32>
    %c0_3 = arith.constant 0 : index
    %c0_4 = arith.constant 0 : index
    %2 = vector.load %arg2[%c0_3, %c0_4] : memref<16x128xf32, #tpu.memory_space<vmem>>, vector<16x128xf32>
    %3 = vector.broadcast %0 : f32 to vector<16x128xf32>
    %4 = arith.subf %1, %3 : vector<16x128xf32>
    %5 = arith.subf %1, %2 : vector<16x128xf32>
    %6 = vector.shape_cast %4 : vector<16x128xf32> to vector<1x16x128xf32>
    %cst = arith.constant dense<0.000000e+00> : vector<1xf32>
    %7 = vector.multi_reduction <add>, %6, %cst [1, 2] : vector<1x16x128xf32> to vector<1xf32>
    %8 = vector.shape_cast %7 : vector<1xf32> to vector<1x1x1xf32>
    %9 = vector.extract %8[0, 0, 0] : f32 from vector<1x1x1xf32>
    %10 = arith.mulf %4, %4 : vector<16x128xf32>
    %11 = vector.shape_cast %10 : vector<16x128xf32> to vector<1x16x128xf32>
    %cst_5 = arith.constant dense<0.000000e+00> : vector<1xf32>
    %12 = vector.multi_reduction <add>, %11, %cst_5 [1, 2] : vector<1x16x128xf32> to vector<1xf32>
    %13 = vector.shape_cast %12 : vector<1xf32> to vector<1x1x1xf32>
    %14 = vector.extract %13[0, 0, 0] : f32 from vector<1x1x1xf32>
    %15 = arith.mulf %5, %5 : vector<16x128xf32>
    %16 = vector.shape_cast %15 : vector<16x128xf32> to vector<1x16x128xf32>
    %cst_6 = arith.constant dense<0.000000e+00> : vector<1xf32>
    %17 = vector.multi_reduction <add>, %16, %cst_6 [1, 2] : vector<1x16x128xf32> to vector<1xf32>
    %18 = vector.shape_cast %17 : vector<1xf32> to vector<1x1x1xf32>
    %19 = vector.extract %18[0, 0, 0] : f32 from vector<1x1x1xf32>
    %c0_7 = arith.constant 0 : index
    %c0_8 = arith.constant 0 : index
    %20 = memref.load %arg4[%c0_7, %c0_8] : memref<1x3xf32, #tpu.memory_space<smem>>
    memref.store %9, %arg4[%c0_7, %c0_8] : memref<1x3xf32, #tpu.memory_space<smem>>
    %c0_9 = arith.constant 0 : index
    %c1 = arith.constant 1 : index
    %21 = memref.load %arg4[%c0_9, %c1] : memref<1x3xf32, #tpu.memory_space<smem>>
    memref.store %14, %arg4[%c0_9, %c1] : memref<1x3xf32, #tpu.memory_space<smem>>
    %c0_10 = arith.constant 0 : index
    %c2 = arith.constant 2 : index
    %22 = memref.load %arg4[%c0_10, %c2] : memref<1x3xf32, #tpu.memory_space<smem>>
    memref.store %19, %arg4[%c0_10, %c2] : memref<1x3xf32, #tpu.memory_space<smem>>
    return
  }
  func.func @transform_0(%arg0: i32) -> (i32, i32) {
    %c0_i32 = arith.constant 0 : i32
    %c0_i32_0 = arith.constant 0 : i32
    %c0_i32_1 = arith.constant 0 : i32
    return %c0_i32, %c0_i32_0 : i32, i32
  }
  func.func @transform_1(%arg0: i32) -> (i32, i32) {
    %c0_i32 = arith.constant 0 : i32
    %c0_i32_0 = arith.constant 0 : i32
    return %arg0, %c0_i32 : i32, i32
  }
  func.func @transform_2(%arg0: i32) -> (i32, i32) {
    %c0_i32 = arith.constant 0 : i32
    %c0_i32_0 = arith.constant 0 : i32
    return %arg0, %c0_i32 : i32, i32
  }
  func.func @transform_3(%arg0: i32) -> (i32, i32) {
    %c0_i32 = arith.constant 0 : i32
    %c0_i32_0 = arith.constant 0 : i32
    return %arg0, %c0_i32 : i32, i32
  }
}

</mosaic_0001>

<bundles_post_ra>
// kernel: r2_loss.1
= control target key start
LH: loop header
LB: loop body
LE: loop exit
PB: predicated region body
PF: predicated region fallthrough
CT: control target
= control target key end

     0   :  { %s141_s0 = inlined_call_operand.<no memory space> [shape: f32[1,1], index: 0, kind: input, shape index: {}]   ;;  %s142_s1 = inlined_call_operand.vmem [shape: f32[16,128], index: 1, kind: input, shape index: {}]   ;;  %s143_s2 = inlined_call_operand.vmem [shape: f32[16,128], index: 2, kind: input, shape index: {}]   ;;  %s144_s3 = inlined_call_operand.vmem [shape: f32[1,3], index: 3, kind: output, shape index: {}]  }
   0x1   :  { %v17_v0 = vld [vmem:[%s143_s2] sm:$0xff]  ;;  %v18_v1 = vld [vmem:[%s143_s2 + $0x8] sm:$0xff]  ;;  %v21_v2 = vstv %s141_s0 }
   0x2   :  { %v19_v3 = vld [vmem:[%s142_s1] sm:$0xff]  ;;  %v22_v4 = vsub.f32 %v17_v0, %v21_v2  ;;  %v23_v5 = vsub.f32 %v18_v1, %v21_v2  ;;  %v20_v6 = vld [vmem:[%s142_s1 + $0x8] sm:$0xff] }
   0x3   :  { %v24_v7 = vsub.f32 %v17_v0, %v19_v3 }
   0x4   :  { %9 = vsyncpa [#allocation4], 0  ;;  %v25_v8 = vsub.f32 %v18_v1, %v20_v6  ;;  %v26_v9 = vadd.f32 %v23_v5, %v22_v4  ;;  %v36_v12 = vmul.f32 %v22_v4, %v22_v4  ;;  %v37_v13 = vmul.f32 %v23_v5, %v23_v5  ;;  %s71_s22 = sshll.u32 %s144_s3, 4  ;;  %s102_s25 = smov [#allocation3]   ;;  %s72_s22 = int_to_ptr.vmem [resolvable:$true] %s71_s22 }
   0x5   :  { %v48_v10 = vmul.f32 %v24_v7, %v24_v7 }
   0x6   :  { %v49_v11 = vmul.f32 %v25_v8, %v25_v8  ;;  %27 = vadd.xlane.f32.xlu0 %v26_v9  ;;  %v38_v15 = vadd.f32 %v37_v13, %v36_v12 }
   0x8   :  { %v50_v14 = vadd.f32 %v49_v11, %v48_v10 }
   0xa   :  { %51 = vadd.xlane.f32.xlu1 %v50_v14 }
   0xe   :  { %39 = vadd.xlane.f32.xlu0 %v38_v15 }
  0x79   :  { %v28_v16 = vpop.xlane.xlu0 %27 }
  0x7a   :  { %v29_v17 = vrot.slane %v28_v16, 4 }
  0x7c   :  { %v30_v18 = vadd.f32 %v29_v17, %v28_v16 }
  0x7d   :  { %v52_v19 = vpop.xlane.xlu1 %51 }
  0x7e   :  { %v53_v20 = vrot.slane %v52_v19, 4  ;;  %v31_v21 = vrot.slane %v30_v18, 2 }
  0x80   :  { %v54_v22 = vadd.f32 %v53_v20, %v52_v19  ;;  %v32_v23 = vadd.f32 %v31_v21, %v30_v18 }
  0x81   :  { %v40_v25 = vpop.xlane.xlu0 %39 }
  0x82   :  { %v55_v24 = vrot.slane %v54_v22, 2  ;;  %v41_v26 = vrot.slane %v40_v25, 4  ;;  %v33_v27 = vrot.slane %v32_v23, 1 }
  0x84   :  { %v42_v28 = vadd.f32 %v41_v26, %v40_v25  ;;  %v34_v29 = vadd.f32 %v33_v27, %v32_v23  ;;  %v56_v30 = vadd.f32 %v55_v24, %v54_v22 }
  0x86   :  { %v43_v31 = vrot.slane %v42_v28, 2  ;;  %81 = vpush %v34_v29  ;;  %v57_v33 = vrot.slane %v56_v30, 1 }
  0x88   :  { %v44_v32 = vadd.f32 %v43_v31, %v42_v28  ;;  %v58_v36 = vadd.f32 %v57_v33, %v56_v30 }
  0x8a   :  { %v45_v34 = vrot.slane %v44_v32, 1 }
  0x8c   :  { %v46_v35 = vadd.f32 %v45_v34, %v44_v32 }
  0x8e   :  { %83 = vpush %v46_v35 }
  0x8f   :  { %85 = vpush %v58_v36 }
  0xb7   :  { %s82_s0 = spop %81 }
  0xb8   :  { %61 = sst [smem:[#allocation3]] %s82_s0 }
  0xbf   :  { %s84_s23 = spop %83 }
  0xc0   :  { %63 = sst [smem:[#allocation3 + $0x1]] %s84_s23  ;;  %s86_s24 = spop %85 }
  0xc1   :  { %65 = sst [smem:[#allocation3 + $0x2]] %s86_s24 }
  0xc2   :  { %74 = dma.smem_to_vmem %s102_s25, 16, %s72_s22, [#allocation4]  }
  0xc3   :  { %100 = dma.done.wait [#allocation4], 16  }
  0xc4   :  { %101 = vsyncadd [#allocation4], 4294967280 }
  0xc5   :  { %79 = sfence }
  0xc6   :  { %80 = vsyncpa [#allocation4], 1 }

</bundles_post_ra>
